<compile_context>
chip_gen: v5e
topology: v5e:2x2
jax: 0.10.0
libtpu: 0.0.40
codegen_flags: <defaults>
</compile_context>

<pallas_src>
import functools

import jax
import jax.numpy as jnp
from jax.experimental import pallas as pl
from jax.experimental.pallas import tpu as pltpu

MIN_VALUE = -1.9282
MAX_VALUE = 9.416

C_IN = 10
C_OUT = 7
K = 5
PAD = 1                       # ConvTranspose1d padding
EDGE = K - 1 - PAD            # zero padding of the equivalent correlation (=3)
C_IN_PAD = 16                 # per-tap channel stride, padded to a sublane multiple
BIAS_ROW = C_IN_PAD - 1       # scratch row holding 1.0 (bias folded into the matmul)


def _convt1d_clamp_kernel(x_ref, w_ref, o_ref, xs_ref, *,
                          n_batch, k_size, edge, l_in, l_out,
                          c_in, c_in_pad, bias_row, min_value, max_value):
    # x_ref : (N, C_in, L)            VMEM  (whole batch, single grid step)
    # w_ref : (C_out, K*C_IN_PAD)     VMEM  (flipped ConvTranspose weight, bias folded)
    # o_ref : (N, C_out, L_out)       VMEM
    # xs_ref: (K*C_IN_PAD, N*L_out)   VMEM  scratch:
    #         xs[k*C_IN_PAD + ci, n*L_out + j] = x_pad[n, ci, j + k]

    # Single vectorized fill: zeros (edge padding + channel padding) and 1.0 on
    # the bias row -- done once (only one grid step).
    row_ids = jax.lax.broadcasted_iota(jnp.int32, xs_ref.shape, 0)
    xs_ref[...] = jnp.where(row_ids == bias_row, 1.0, 0.0).astype(xs_ref.dtype)

    x = x_ref[...]                                      # (N, C_in, L)
    for k in range(k_size):                             # static, fully unrolled
        s = k - edge                                    # tap k: xs[., j] = x[., j + s]
        dst_lo = max(0, -s)
        dst_hi = min(l_out, l_in - s)
        if dst_hi <= dst_lo:
            continue
        r0 = k * c_in_pad                               # sublane-aligned row start
        for nb in range(n_batch):                       # static batch loop
            xs_ref[r0:r0 + c_in,
                   nb * l_out + dst_lo:nb * l_out + dst_hi] = (
                       x[nb, :, dst_lo + s:dst_hi + s])

    # ONE fused MXU matmul for the whole batch:
    #   (C_out, K*C_IN_PAD) x (K*C_IN_PAD, N*L_out) -> (C_out, N*L_out)
    acc = jnp.dot(w_ref[...], xs_ref[...], preferred_element_type=jnp.float32)
    acc = jnp.minimum(jnp.maximum(acc, min_value), max_value)   # clamp_min / clamp_max
    acc = acc.astype(o_ref.dtype)
    for nb in range(n_batch):                           # static lane slices
        o_ref[nb] = acc[:, nb * l_out:(nb + 1) * l_out]


def prepare_params(weight_t, bias):
    """One-time weight prep (hoisted out of the per-call forward).

    weight_t: (C_in, C_out, K) -- PyTorch ConvTranspose1d layout.
    bias    : (C_out,)
    Returns w2d: (C_out, K*C_IN_PAD) correlation-form weight, channel-padded per
    tap to C_IN_PAD and with the bias folded into column (0*C_IN_PAD + BIAS_ROW).
    """
    c_in, c_out, k_size = weight_t.shape
    # w_corr[k, ci, co] = weight_t[ci, co, K-1-k]  (flip for correlation form)
    w_corr = jnp.transpose(weight_t[:, :, ::-1], (2, 0, 1))          # (K, C_in, C_out)
    w_pad = jnp.zeros((k_size, C_IN_PAD, c_out), jnp.float32)
    w_pad = w_pad.at[:, :c_in, :].set(w_corr.astype(jnp.float32))
    w_pad = w_pad.at[0, BIAS_ROW, :].set(bias.astype(jnp.float32))   # fold bias
    w2d = w_pad.reshape(k_size * C_IN_PAD, c_out).T                  # (C_out, K*C_IN_PAD)
    return jnp.asarray(w2d, jnp.float32)


def conv_transpose1d_clamp(x_ncl, w2d, min_value=MIN_VALUE, max_value=MAX_VALUE):
    """x_ncl: (N, C_in, L) f32; w2d: (C_out, K*C_IN_PAD) from prepare_params.
    Returns (N, C_out, L_out) f32 in PyTorch's NCL layout."""
    n, c_in, l = x_ncl.shape
    c_out, kc_pad = w2d.shape
    k_size = kc_pad // C_IN_PAD
    l_out = (l - 1) - 2 * PAD + k_size          # stride = 1
    edge = k_size - 1 - PAD

    kernel = functools.partial(
        _convt1d_clamp_kernel,
        n_batch=n, k_size=k_size, edge=edge, l_in=l, l_out=l_out,
        c_in=c_in, c_in_pad=C_IN_PAD, bias_row=BIAS_ROW,
        min_value=float(min_value), max_value=float(max_value))

    flops = 2 * c_out * kc_pad * n * l_out
    bytes_accessed = 4 * (x_ncl.size + w2d.size + n * c_out * l_out)

    return pl.pallas_call(
        kernel,
        out_shape=jax.ShapeDtypeStruct((n, c_out, l_out), jnp.float32),
        grid_spec=pltpu.PrefetchScalarGridSpec(
            num_scalar_prefetch=0,
            grid=(1,),                              # single step: whole problem
            in_specs=[
                pl.BlockSpec((n, c_in, l), lambda i: (0, 0, 0)),
                pl.BlockSpec((c_out, kc_pad), lambda i: (0, 0)),
            ],
            out_specs=pl.BlockSpec((n, c_out, l_out), lambda i: (0, 0, 0)),
            scratch_shapes=[pltpu.VMEM((kc_pad, n * l_out), jnp.float32)],
        ),
        compiler_params=pltpu.CompilerParams(
            dimension_semantics=("arbitrary",)),
        cost_estimate=pl.CostEstimate(
            flops=flops, transcendentals=0, bytes_accessed=bytes_accessed),
    )(x_ncl, w2d)


def _reference(x_ncl, weight_t, bias):
    """Pure-JAX reference of ConvTranspose1d(stride=1, pad=1) + clamp."""
    k_size = weight_t.shape[-1]
    edge = k_size - 1 - PAD
    x_pad = jnp.pad(x_ncl, ((0, 0), (0, 0), (edge, edge)))
    w_corr = jnp.transpose(weight_t[:, :, ::-1], (1, 0, 2))          # (C_out, C_in, K)
    out = jax.lax.conv_general_dilated(
        x_pad, w_corr, window_strides=(1,), padding="VALID",
        dimension_numbers=("NCH", "OIH", "NCH"))
    out = out + bias.reshape(1, -1, 1)
    return jnp.clip(out, MIN_VALUE, MAX_VALUE)


if __name__ == "__main__":
    key = jax.random.PRNGKey(0)
    kx, kw, kb = jax.random.split(key, 3)

    # Small shapes consistent with ConvTranspose1d(10, 7, 5, stride=1, padding=1)
    N, L = 2, 16
    x = jax.random.normal(kx, (N, C_IN, L), dtype=jnp.float32)

    # Deterministic parameter init (uniform, like PyTorch's default range).
    fan_in = C_IN * K
    bound = 1.0 / (fan_in ** 0.5)
    weight_t = jax.random.uniform(kw, (C_IN, C_OUT, K), jnp.float32,
                                  minval=-bound, maxval=bound)
    bias = jax.random.uniform(kb, (C_OUT,), jnp.float32,
                              minval=-bound, maxval=bound)

    # One-time weight prep (not part of the per-call forward).
    w2d = prepare_params(weight_t, bias)

    out = conv_transpose1d_clamp(x, w2d)
    out = jax.block_until_ready(out)

    ref = jax.block_until_ready(_reference(x, weight_t, bias))
    assert out.shape == (N, C_OUT, L + 2), out.shape
    assert jnp.allclose(out, ref, atol=1e-5, rtol=1e-5), "mismatch vs reference"

    print("KERNEL_OK")
</pallas_src>

<mosaic_0001>
module attributes {stable_mosaic.version = 11 : i64} {
  func.func @_convt1d_clamp_kernel(%arg0: i32, %arg1: memref<2x10x16xf32, #tpu.memory_space<vmem>>, %arg2: memref<7x80xf32, #tpu.memory_space<vmem>>, %arg3: memref<2x7x18xf32, #tpu.memory_space<vmem>>, %arg4: memref<80x36xf32, #tpu.memory_space<vmem>>) attributes {dimension_semantics = [#tpu.dimension_semantics<arbitrary>], iteration_bounds = array<i64: 1>, scalar_prefetch = 0 : i64, scratch_operands = 1 : i64, tpu.core_type = #tpu.core_type<tc>, window_params = [{pipeline_mode = #tpu.pipeline_mode<synchronous>, transform_indices = @transform_0, window_bounds = array<i64: 2, 10, 16>}, {pipeline_mode = #tpu.pipeline_mode<synchronous>, transform_indices = @transform_1, window_bounds = array<i64: 7, 80>}, {pipeline_mode = #tpu.pipeline_mode<synchronous>, transform_indices = @transform_2, window_bounds = array<i64: 2, 7, 18>}]} {
    %0 = tpu.iota {dimensions = array<i32: 0>} : vector<80x36xi32>
    %c15_i32 = arith.constant 15 : i32
    %1 = vector.broadcast %c15_i32 : i32 to vector<80x36xi32>
    %2 = arith.cmpi eq, %0, %1 : vector<80x36xi32>
    %cst = arith.constant 1.000000e+00 : f32
    %cst_0 = arith.constant 0.000000e+00 : f32
    %3 = vector.broadcast %cst : f32 to vector<80x36xf32>
    %4 = vector.broadcast %cst_0 : f32 to vector<80x36xf32>
    %5 = arith.select %2, %3, %4 : vector<80x36xi1>, vector<80x36xf32>
    %c0 = arith.constant 0 : index
    %c0_1 = arith.constant 0 : index
    %6 = vector.load %arg4[%c0, %c0_1] : memref<80x36xf32, #tpu.memory_space<vmem>>, vector<80x36xf32>
    tpu.vector_store %arg4[%c0, %c0_1], %5 {strides = array<i32>} : memref<80x36xf32, #tpu.memory_space<vmem>>, vector<80x36xf32>,
    %c0_2 = arith.constant 0 : index
    %c0_3 = arith.constant 0 : index
    %c0_4 = arith.constant 0 : index
    %7 = vector.load %arg1[%c0_2, %c0_3, %c0_4] : memref<2x10x16xf32, #tpu.memory_space<vmem>>, vector<2x10x16xf32>
    %8 = vector.extract_strided_slice %7 {offsets = [0, 0, 0], sizes = [1, 10, 15], strides = [1, 1, 1]} : vector<2x10x16xf32> to vector<1x10x15xf32>
    %9 = vector.shape_cast %8 : vector<1x10x15xf32> to vector<10x15xf32>
    %c0_5 = arith.constant 0 : index
    %c3 = arith.constant 3 : index
    %10 = vector.load %arg4[%c0_5, %c3] : memref<80x36xf32, #tpu.memory_space<vmem>>, vector<10x15xf32>
    tpu.vector_store %arg4[%c0_5, %c3], %9 {strides = array<i32>} : memref<80x36xf32, #tpu.memory_space<vmem>>, vector<10x15xf32>,
    %11 = vector.extract_strided_slice %7 {offsets = [1, 0, 0], sizes = [1, 10, 15], strides = [1, 1, 1]} : vector<2x10x16xf32> to vector<1x10x15xf32>
    %12 = vector.shape_cast %11 : vector<1x10x15xf32> to vector<10x15xf32>
    %c0_6 = arith.constant 0 : index
    %c21 = arith.constant 21 : index
    %13 = vector.load %arg4[%c0_6, %c21] : memref<80x36xf32, #tpu.memory_space<vmem>>, vector<10x15xf32>
    tpu.vector_store %arg4[%c0_6, %c21], %12 {strides = array<i32>} : memref<80x36xf32, #tpu.memory_space<vmem>>, vector<10x15xf32>,
    %14 = vector.extract_strided_slice %7 {offsets = [0, 0, 0], sizes = [1, 10, 16], strides = [1, 1, 1]} : vector<2x10x16xf32> to vector<1x10x16xf32>
    %15 = vector.shape_cast %14 : vector<1x10x16xf32> to vector<10x16xf32>
    %c16 = arith.constant 16 : index
    %c2 = arith.constant 2 : index
    %16 = vector.load %arg4[%c16, %c2] : memref<80x36xf32, #tpu.memory_space<vmem>>, vector<10x16xf32>
    tpu.vector_store %arg4[%c16, %c2], %15 {strides = array<i32>} : memref<80x36xf32, #tpu.memory_space<vmem>>, vector<10x16xf32>,
    %17 = vector.extract_strided_slice %7 {offsets = [1, 0, 0], sizes = [1, 10, 16], strides = [1, 1, 1]} : vector<2x10x16xf32> to vector<1x10x16xf32>
    %18 = vector.shape_cast %17 : vector<1x10x16xf32> to vector<10x16xf32>
    %c16_7 = arith.constant 16 : index
    %c20 = arith.constant 20 : index
    %19 = vector.load %arg4[%c16_7, %c20] : memref<80x36xf32, #tpu.memory_space<vmem>>, vector<10x16xf32>
    tpu.vector_store %arg4[%c16_7, %c20], %18 {strides = array<i32>} : memref<80x36xf32, #tpu.memory_space<vmem>>, vector<10x16xf32>,
    %20 = vector.extract_strided_slice %7 {offsets = [0, 0, 0], sizes = [1, 10, 16], strides = [1, 1, 1]} : vector<2x10x16xf32> to vector<1x10x16xf32>
    %21 = vector.shape_cast %20 : vector<1x10x16xf32> to vector<10x16xf32>
    %c32 = arith.constant 32 : index
    %c1 = arith.constant 1 : index
    %22 = vector.load %arg4[%c32, %c1] : memref<80x36xf32, #tpu.memory_space<vmem>>, vector<10x16xf32>
    tpu.vector_store %arg4[%c32, %c1], %21 {strides = array<i32>} : memref<80x36xf32, #tpu.memory_space<vmem>>, vector<10x16xf32>,
    %23 = vector.extract_strided_slice %7 {offsets = [1, 0, 0], sizes = [1, 10, 16], strides = [1, 1, 1]} : vector<2x10x16xf32> to vector<1x10x16xf32>
    %24 = vector.shape_cast %23 : vector<1x10x16xf32> to vector<10x16xf32>
    %c32_8 = arith.constant 32 : index
    %c19 = arith.constant 19 : index
    %25 = vector.load %arg4[%c32_8, %c19] : memref<80x36xf32, #tpu.memory_space<vmem>>, vector<10x16xf32>
    tpu.vector_store %arg4[%c32_8, %c19], %24 {strides = array<i32>} : memref<80x36xf32, #tpu.memory_space<vmem>>, vector<10x16xf32>,
    %26 = vector.extract_strided_slice %7 {offsets = [0, 0, 0], sizes = [1, 10, 16], strides = [1, 1, 1]} : vector<2x10x16xf32> to vector<1x10x16xf32>
    %27 = vector.shape_cast %26 : vector<1x10x16xf32> to vector<10x16xf32>
    %c48 = arith.constant 48 : index
    %c0_9 = arith.constant 0 : index
    %28 = vector.load %arg4[%c48, %c0_9] : memref<80x36xf32, #tpu.memory_space<vmem>>, vector<10x16xf32>
    tpu.vector_store %arg4[%c48, %c0_9], %27 {strides = array<i32>} : memref<80x36xf32, #tpu.memory_space<vmem>>, vector<10x16xf32>,
    %29 = vector.extract_strided_slice %7 {offsets = [1, 0, 0], sizes = [1, 10, 16], strides = [1, 1, 1]} : vector<2x10x16xf32> to vector<1x10x16xf32>
    %30 = vector.shape_cast %29 : vector<1x10x16xf32> to vector<10x16xf32>
    %c48_10 = arith.constant 48 : index
    %c18 = arith.constant 18 : index
    %31 = vector.load %arg4[%c48_10, %c18] : memref<80x36xf32, #tpu.memory_space<vmem>>, vector<10x16xf32>
    tpu.vector_store %arg4[%c48_10, %c18], %30 {strides = array<i32>} : memref<80x36xf32, #tpu.memory_space<vmem>>, vector<10x16xf32>,
    %32 = vector.extract_strided_slice %7 {offsets = [0, 0, 1], sizes = [1, 10, 15], strides = [1, 1, 1]} : vector<2x10x16xf32> to vector<1x10x15xf32>
    %33 = vector.shape_cast %32 : vector<1x10x15xf32> to vector<10x15xf32>
    %c64 = arith.constant 64 : index
    %c0_11 = arith.constant 0 : index
    %34 = vector.load %arg4[%c64, %c0_11] : memref<80x36xf32, #tpu.memory_space<vmem>>, vector<10x15xf32>
    tpu.vector_store %arg4[%c64, %c0_11], %33 {strides = array<i32>} : memref<80x36xf32, #tpu.memory_space<vmem>>, vector<10x15xf32>,
    %35 = vector.extract_strided_slice %7 {offsets = [1, 0, 1], sizes = [1, 10, 15], strides = [1, 1, 1]} : vector<2x10x16xf32> to vector<1x10x15xf32>
    %36 = vector.shape_cast %35 : vector<1x10x15xf32> to vector<10x15xf32>
    %c64_12 = arith.constant 64 : index
    %c18_13 = arith.constant 18 : index
    %37 = vector.load %arg4[%c64_12, %c18_13] : memref<80x36xf32, #tpu.memory_space<vmem>>, vector<10x15xf32>
    tpu.vector_store %arg4[%c64_12, %c18_13], %36 {strides = array<i32>} : memref<80x36xf32, #tpu.memory_space<vmem>>, vector<10x15xf32>,
    %c0_14 = arith.constant 0 : index
    %c0_15 = arith.constant 0 : index
    %38 = vector.load %arg2[%c0_14, %c0_15] : memref<7x80xf32, #tpu.memory_space<vmem>>, vector<7x80xf32>
    %c0_16 = arith.constant 0 : index
    %c0_17 = arith.constant 0 : index
    %39 = vector.load %arg4[%c0_16, %c0_17] : memref<80x36xf32, #tpu.memory_space<vmem>>, vector<80x36xf32>
    %cst_18 = arith.constant dense<0.000000e+00> : vector<7x36xf32>
    %40 = tpu.matmul %38, %39, %cst_18 {dimension_numbers = #tpu.dot_dimension_numbers<[1], [0], [0], [1], [0, 0, 1, 1], [], []>} : vector<7x80xf32>, vector<80x36xf32>, vector<7x36xf32> -> vector<7x36xf32>
    %cst_19 = arith.constant -1.928200e+00 : f32
    %41 = vector.broadcast %cst_19 : f32 to vector<7x36xf32>
    %42 = arith.maximumf %40, %41 : vector<7x36xf32>
    %cst_20 = arith.constant 9.416000e+00 : f32
    %43 = vector.broadcast %cst_20 : f32 to vector<7x36xf32>
    %44 = arith.minimumf %42, %43 : vector<7x36xf32>
    %45 = vector.extract_strided_slice %44 {offsets = [0, 0], sizes = [7, 18], strides = [1, 1]} : vector<7x36xf32> to vector<7x18xf32>
    %c0_21 = arith.constant 0 : index
    %c0_22 = arith.constant 0 : index
    %c0_23 = arith.constant 0 : index
    %46 = vector.load %arg3[%c0_21, %c0_22, %c0_23] : memref<2x7x18xf32, #tpu.memory_space<vmem>>, vector<1x7x18xf32>
    %47 = vector.shape_cast %46 : vector<1x7x18xf32> to vector<7x18xf32>
    %48 = vector.shape_cast %45 : vector<7x18xf32> to vector<1x7x18xf32>
    tpu.vector_store %arg3[%c0_21, %c0_22, %c0_23], %48 {strides = array<i32>} : memref<2x7x18xf32, #tpu.memory_space<vmem>>, vector<1x7x18xf32>,
    %49 = vector.extract_strided_slice %44 {offsets = [0, 18], sizes = [7, 18], strides = [1, 1]} : vector<7x36xf32> to vector<7x18xf32>
    %c1_24 = arith.constant 1 : index
    %c0_25 = arith.constant 0 : index
    %c0_26 = arith.constant 0 : index
    %50 = vector.load %arg3[%c1_24, %c0_25, %c0_26] : memref<2x7x18xf32, #tpu.memory_space<vmem>>, vector<1x7x18xf32>
    %51 = vector.shape_cast %50 : vector<1x7x18xf32> to vector<7x18xf32>
    %52 = vector.shape_cast %49 : vector<7x18xf32> to vector<1x7x18xf32>
    tpu.vector_store %arg3[%c1_24, %c0_25, %c0_26], %52 {strides = array<i32>} : memref<2x7x18xf32, #tpu.memory_space<vmem>>, vector<1x7x18xf32>,
    return
  }
  func.func @transform_0(%arg0: i32) -> (i32, i32, i32) {
    %c0_i32 = arith.constant 0 : i32
    %c0_i32_0 = arith.constant 0 : i32
    %c0_i32_1 = arith.constant 0 : i32
    %c0_i32_2 = arith.constant 0 : i32
    return %c0_i32, %c0_i32_0, %c0_i32_1 : i32, i32, i32
  }
  func.func @transform_1(%arg0: i32) -> (i32, i32) {
    %c0_i32 = arith.constant 0 : i32
    %c0_i32_0 = arith.constant 0 : i32
    %c0_i32_1 = arith.constant 0 : i32
    return %c0_i32, %c0_i32_0 : i32, i32
  }
  func.func @transform_2(%arg0: i32) -> (i32, i32, i32) {
    %c0_i32 = arith.constant 0 : i32
    %c0_i32_0 = arith.constant 0 : i32
    %c0_i32_1 = arith.constant 0 : i32
    %c0_i32_2 = arith.constant 0 : i32
    return %c0_i32, %c0_i32_0, %c0_i32_1 : i32, i32, i32
  }
}

</mosaic_0001>

<bundles_post_ra>
// kernel: tpu_custom_call.1
= control target key start
LH: loop header
LB: loop body
LE: loop exit
PB: predicated region body
PF: predicated region fallthrough
CT: control target
= control target key end

     0   :  { %s217_s13 = smov 127   ;;  %s218_s16 = smov 18   ;;  %vm42_vm0 = vcmask 293888   ;;  %v220_v4 = vmov 0.0   ;;  %vm123_vm1 = vcmask 123904   ;;  %vm133_vm2 = vcmask 271504   ;;  %s274_s0 = inlined_call_operand.vmem [shape: f32[2,10,16], index: 0, kind: input, shape index: {}]   ;;  %s275_s1 = inlined_call_operand.vmem [shape: f32[7,80], index: 1, kind: input, shape index: {}]   ;;  %s276_s2 = inlined_call_operand.vmem [shape: f32[2,7,18], index: 2, kind: output, shape index: {}]  }
   0x1   :  { %v54_v0 = vld [vmem:[%s274_s0 + $0x8] sm:$0x3]  ;;  %v53_v1 = vld [vmem:[%s274_s0] sm:$0xff]  ;;  %v56_v2 = vld [vmem:[%s274_s0 + $0x18] sm:$0x3]  ;;  %s219_s19 = smov 17   ;;  %v11_v8 = vlaneseq }
   0x2   :  { %137 = vrot.lane.b32.xlu0 %v54_v0, %s217_s13  ;;  %135 = vrot.lane.b32.xlu1 %v53_v1, %s217_s13  ;;  %v55_v3 = vld [vmem:[%s274_s0 + $0x10] sm:$0xff]  ;;  %52 = vst.msk [vmem:[#allocation2 + $0x48] sm:$0xff] %vm42_vm0, %v220_v4  ;;  %s221_s20 = smov 1   ;;  %s222_s21 = smov 19   ;;  %vm121_vm3 = vcmask 130048   ;;  %vm131_vm4 = vcmask 277648  }
   0x3   :  { %127 = vrot.lane.b32.xlu2 %v56_v2, %s218_s16  ;;  %43 = vst.msk [vmem:[#allocation2] sm:$0xff] %vm42_vm0, %v220_v4  ;;  %s223_s0 = smov 2   ;;  %s224_s22 = smov 20   ;;  %vm107_vm5 = vcmask 138248   ;;  %v12_v9 = vshrl.u32 %v11_v8, 7  ;;  %vm143_vm6 = vcmask 115712  }
   0x4   :  { %45 = vst.msk [vmem:[#allocation2 + $0x10] sm:$0xff] %vm42_vm0, %v220_v4  ;;  %s225_s23 = smov 3   ;;  %s226_s24 = smov 21   ;;  %vm141_vm7 = vcmask 121856   ;;  %vm153_vm9 = vcmask 263312   ;;  %vm151_vm10 = vcmask 269456  }
   0x5   :  { %46 = vst.msk [vmem:[#allocation2 + $0x18] sm:$0xff] %vm42_vm0, %v220_v4  ;;  %v13_v10 = vadd.s32 8, %v12_v9  ;;  %vm67_vm11 = vcmask 140312   ;;  %vm109_vm12 = vcmask 132104   ;;  %vm119_vm13 = vcmask 279704   ;;  %s227_s27 = smov 110  }
   0x6   :  { %47 = vst.msk [vmem:[#allocation2 + $0x20] sm:$0xff] %vm42_vm0, %v220_v4  ;;  %vm117_vm14 = vcmask 285848   ;;  %vm89_vm15 = vcmask 140304   ;;  %v155_v36 = vld [vmem:[%s275_s1] sm:$0x7f] }
   0x7   :  { %48 = vst.msk [vmem:[#allocation2 + $0x28] sm:$0xff] %vm42_vm0, %v220_v4  ;;  %vm23_vm8 = vcmp.eq.s32.totalorder %v13_v10, 15 }
   0x8   :  { %49 = vst.msk [vmem:[#allocation2 + $0x30] sm:$0xff] %vm42_vm0, %v220_v4  ;;  %v33_v13 = vsel %vm23_vm8, 1.0, %v220_v4 }
   0x9   :  { %50 = vst.msk [vmem:[#allocation2 + $0x38] sm:$0xff] %vm42_vm0, %v220_v4 }
   0xa   :  { %147 = vrot.lane.b32.xlu0 %v56_v2, %s219_s19  ;;  %145 = vrot.lane.b32.xlu1 %v55_v3, %s219_s19  ;;  %51 = vst.msk [vmem:[#allocation2 + $0x40] sm:$0xff] %vm42_vm0, %v220_v4 }
   0xb   :  { %125 = vrot.lane.b32.xlu2 %v55_v3, %s218_s16  ;;  %124 = vst.msk [vmem:[#allocation2 + $0x38] sm:$0x3] %vm123_vm1, %v54_v0  ;;  %vm87_vm1 = vcmask 146448  }
   0xc   :  { %122 = vst.msk [vmem:[#allocation2 + $0x30] sm:$0xff] %vm121_vm3, %v53_v1  ;;  %vm79_vm3 = vcmask 287912  }
   0xd   :  { %44 = vst.msk [vmem:[#allocation2 + $0x8] sm:$0xff] %vm42_vm0, %v33_v13  ;;  %vm99_vm0 = vcmask 287904  }
  0x12   :  { %103 = vrot.lane.b32.xlu0 %v54_v0, %s221_s20  ;;  %113 = vrot.lane.b32.xlu1 %v56_v2, %s222_s21 }
  0x13   :  { %101 = vrot.lane.b32.xlu2 %v53_v1, %s221_s20 }
  0x1a   :  { %111 = vrot.lane.b32.xlu0 %v55_v3, %s222_s21  ;;  %83 = vrot.lane.b32.xlu1 %v54_v0, %s223_s0 }
  0x1b   :  { %93 = vrot.lane.b32.xlu2 %v56_v2, %s224_s22 }
  0x22   :  { %81 = vrot.lane.b32.xlu0 %v53_v1, %s223_s0  ;;  %91 = vrot.lane.b32.xlu1 %v55_v3, %s224_s22 }
  0x23   :  { %61 = vrot.lane.b32.xlu2 %v54_v0, %s225_s23 }
  0x2a   :  { %73 = vrot.lane.b32.xlu0 %v56_v2, %s226_s24  ;;  %59 = vrot.lane.b32.xlu1 %v53_v1, %s225_s23 }
  0x2b   :  { %71 = vrot.lane.b32.xlu2 %v55_v3, %s226_s24 }
  0x5d   :  { %v128_v5 = vpop.permute.xlu2 %127 }
  0x5e   :  { %134 = vst.msk [vmem:[#allocation2 + $0x38] sm:$0x3] %vm133_vm2, %v128_v5  ;;  %vm97_vm2 = vcmask 294048  }
  0x65   :  { %v126_v6 = vpop.permute.xlu2 %125  ;;  %v163_v22 = vld [vmem:[#allocation2 + $0x38] sm:$0xff] }
  0x66   :  { %132 = vst.msk [vmem:[#allocation2 + $0x30] sm:$0xff] %vm131_vm4, %v126_v6  ;;  %vm65_vm4 = vcmask 146456  }
  0x6d   :  { %v102_v7 = vpop.permute.xlu2 %101  ;;  %v162_v23 = vld [vmem:[#allocation2 + $0x30] sm:$0xff] }
  0x6e   :  { %108 = vst.msk [vmem:[#allocation2 + $0x20] sm:$0xff] %vm107_vm5, %v102_v7  ;;  %vm77_vm5 = vcmask 294056  }
  0x74   :  { %v138_v11 = vpop.permute.xlu0 %137  ;;  %v136_v12 = vpop.permute.xlu1 %135 }
  0x75   :  { %144 = vst.msk [vmem:[#allocation2 + $0x48] sm:$0x3] %vm143_vm6, %v138_v11  ;;  %v94_v14 = vpop.permute.xlu2 %93  ;;  %vm166_vm6 = vcmask 654336  }
  0x76   :  { %142 = vst.msk [vmem:[#allocation2 + $0x40] sm:$0xff] %vm141_vm7, %v136_v12  ;;  %vm192_vm7 = vcmask 145408  }
  0x7c   :  { %v148_v15 = vpop.permute.xlu0 %147  ;;  %v146_v16 = vpop.permute.xlu1 %145 }
  0x7d   :  { %154 = vst.msk [vmem:[#allocation2 + $0x48] sm:$0x3] %vm153_vm9, %v148_v15  ;;  %v62_v17 = vpop.permute.xlu2 %61 }
  0x7e   :  { %152 = vst.msk [vmem:[#allocation2 + $0x40] sm:$0xff] %vm151_vm10, %v146_v16 }
  0x7f   :  { %68 = vst.msk [vmem:[#allocation2 + $0x8] sm:$0x3] %vm67_vm11, %v62_v17 }
  0x84   :  { %v104_v18 = vpop.permute.xlu0 %103  ;;  %v165_v19 = vld [vmem:[#allocation2 + $0x48] sm:$0xff]  ;;  %v114_v20 = vpop.permute.xlu1 %113 }
  0x85   :  { %110 = vst.msk [vmem:[#allocation2 + $0x28] sm:$0x3] %vm109_vm12, %v104_v18  ;;  %176 = vmatpush.msra.mxu0 %v165_v19  ;;  %v164_v21 = vld [vmem:[#allocation2 + $0x40] sm:$0xff]  ;;  %v72_v31 = vpop.permute.xlu2 %71 }
  0x86   :  { %120 = vst.msk [vmem:[#allocation2 + $0x28] sm:$0x3] %vm119_vm13, %v114_v20 }
  0x87   :  { %177 = vmatpush.msra.mxu0 %v164_v21 }
  0x89   :  { %178 = vmatpush.msra.mxu0 %v163_v22 }
  0x8b   :  { %179 = vmatpush.msra.mxu0 %v162_v23 }
  0x8c   :  { %v112_v24 = vpop.permute.xlu0 %111  ;;  %v84_v25 = vpop.permute.xlu1 %83 }
  0x8d   :  { %118 = vst.msk [vmem:[#allocation2 + $0x20] sm:$0xff] %vm117_vm14, %v112_v24  ;;  %v161_v26 = vld [vmem:[#allocation2 + $0x28] sm:$0xff] }
  0x8e   :  { %90 = vst.msk [vmem:[#allocation2 + $0x18] sm:$0x3] %vm89_vm15, %v84_v25  ;;  %180 = vmatpush.msra.mxu0 %v161_v26 }
  0x8f   :  { %100 = vst.msk [vmem:[#allocation2 + $0x18] sm:$0x3] %vm99_vm0, %v94_v14 }
  0x94   :  { %v82_v27 = vpop.permute.xlu0 %81  ;;  %v92_v28 = vpop.permute.xlu1 %91  ;;  %v160_v29 = vld [vmem:[#allocation2 + $0x20] sm:$0xff] }
  0x95   :  { %88 = vst.msk [vmem:[#allocation2 + $0x10] sm:$0xff] %vm87_vm1, %v82_v27  ;;  %181 = vmatpush.msra.mxu0 %v160_v29 }
  0x96   :  { %98 = vst.msk [vmem:[#allocation2 + $0x10] sm:$0xff] %vm97_vm2, %v92_v28  ;;  %v159_v30 = vld [vmem:[#allocation2 + $0x18] sm:$0xff] }
  0x97   :  { %182 = vmatpush.msra.mxu0 %v159_v30 }
  0x9c   :  { %v74_v32 = vpop.permute.xlu0 %73  ;;  %v60_v33 = vpop.permute.xlu1 %59 }
  0x9d   :  { %80 = vst.msk [vmem:[#allocation2 + $0x8] sm:$0x3] %vm79_vm3, %v74_v32  ;;  %v158_v34 = vld [vmem:[#allocation2 + $0x10] sm:$0xff] }
  0x9e   :  { %66 = vst.msk [vmem:[#allocation2] sm:$0xff] %vm65_vm4, %v60_v33  ;;  %183 = vmatpush.msra.mxu0 %v158_v34 }
  0x9f   :  { %78 = vst.msk [vmem:[#allocation2] sm:$0xff] %vm77_vm5, %v72_v31 }
  0xa4   :  { %v157_v35 = vld [vmem:[#allocation2 + $0x8] sm:$0xff] }
  0xa5   :  { %184 = vmatpush.msra.mxu0 %v157_v35 }
  0xa6   :  { %v156_v37 = vld [vmem:[#allocation2] sm:$0xff] }
  0xa7   :  { %185 = vmatpush.msra.mxu0 %v156_v37 }
  0xa8   :  { %204 = vmatmul.msk.f32.vlgmr.msra.gmra.mxu0 %vm166_vm6, %v155_v36 }
 0x125   :  { %v187_v38 = vpop.f32.mrf.mxu0 }
 0x126   :  { %v190_v39 = vmax.f32 %v187_v38, -1.9282 }
 0x128   :  { %v191_v40 = vmin.f32 %v190_v39, 9.416 }
 0x12a   :  { %195 = vrot.lane.b32.xlu0 %v191_v40, %s227_s27  ;;  %193 = vst.msk [vmem:[%s276_s2] sm:$0x7f] %vm192_vm7, %v191_v40 }
 0x19c   :  { %v196_v41 = vpop.permute.xlu0 %195 }
 0x19d   :  { %205 = vst.msk [vmem:[%s276_s2 + $0x8] sm:$0x7f] %vm192_vm7, %v196_v41 }

</bundles_post_ra>
